<compile_context>
chip_gen: v7x
topology: tpu7x:2x2x1
jax: 0.10.0
libtpu: 0.0.40
codegen_flags: <defaults>
</compile_context>

<pallas_src>
import functools
import numpy as np
import jax
import jax.numpy as jnp
from jax.experimental import pallas as pl
from jax.experimental.pallas import tpu as pltpu

_MAX_BLOCK_BYTES = 4 * 1024 * 1024  # per output block (Pallas double-buffers it)


def _round_up(x, m):
    return -(-x // m) * m


# --------------------------------------------------------------------------
# Kernel: o[r, l] = sin(global_row * row_scale[l] + lane_offset[l])
# Both layouts (flat and 2-D) use this same body; they differ only in how the
# host builds row_scale / lane_offset and reshapes the output.
# --------------------------------------------------------------------------
def _sinusoid_kernel(row_scale_ref, lane_off_ref, o_ref, *, rows_per_block):
    TR, _ = o_ref.shape
    row0 = (pl.program_id(0) * rows_per_block).astype(jnp.float32)
    row = row0 + jax.lax.broadcasted_iota(jnp.int32, (TR, 1), 0).astype(jnp.float32)
    # One multiply-add + one sin per element; all lane-dependent constants are
    # resident (1, lanes) VMEM inputs (precomputed on host in f64).
    o_ref[...] = jnp.sin(row * row_scale_ref[...] + lane_off_ref[...])


# --------------------------------------------------------------------------
# Host-side lane-constant builders (float64, matching the reference np.power).
# --------------------------------------------------------------------------
def _lane_constants_flat(d_hid):
    """Flat layout (128 % d_hid == 0): flat index f = row*128 + lane maps onto
    (pos, j) with j = lane % d_hid, pos = row*per_row + lane // d_hid."""
    per_row = 128 // d_hid
    lane = np.arange(128)
    j = lane % d_hid
    inv_freq = np.power(10000.0, -2.0 * (j // 2) / d_hid)        # f64
    phase = (j % 2) * (np.pi / 2.0)                               # cos(x) = sin(x + pi/2)
    pos_in_row = lane // d_hid
    row_scale = per_row * inv_freq
    lane_offset = pos_in_row * inv_freq + phase
    return (jnp.asarray(row_scale, jnp.float32).reshape(1, 128),
            jnp.asarray(lane_offset, jnp.float32).reshape(1, 128))


def _lane_constants_2d(d_hid, lanes):
    """Natural layout (rows=positions, lanes>=d_hid padded to a multiple of 128).
    Padding lanes get row_scale = lane_offset = 0 -> sin(0) = 0, sliced off."""
    j = np.arange(lanes)
    valid = j < d_hid
    jc = np.minimum(j, d_hid - 1)
    inv_freq = np.where(valid, np.power(10000.0, -2.0 * (jc // 2) / d_hid), 0.0)
    phase = np.where(valid, (jc % 2) * (np.pi / 2.0), 0.0)
    return (jnp.asarray(inv_freq, jnp.float32).reshape(1, lanes),
            jnp.asarray(phase, jnp.float32).reshape(1, lanes))


# --------------------------------------------------------------------------
# Tiling / grid helpers.
# --------------------------------------------------------------------------
def _choose_rows(n_rows, lanes):
    """One block if it fits the 4 MiB cap; otherwise 8-aligned row tiles with an
    EVEN block count (so v7x core-parallel splits evenly) and a padded final
    block (all stores stay unmasked, no ragged last block)."""
    if n_rows * lanes * 4 <= _MAX_BLOCK_BYTES:
        return n_rows, 1
    tr = max(8, (_MAX_BLOCK_BYTES // (4 * lanes)) // 8 * 8)
    nblk = -(-n_rows // tr)
    if nblk % 2:
        nblk += 1
    return tr, nblk


def _dimension_semantics(nblk):
    """Use CORE_PARALLEL on v7x (2 TensorCores) when there is more than one
    block; plain 'parallel' elsewhere (near-zero codegen impact on 1-TC chips)."""
    if nblk >= 2:
        try:
            kind = jax.devices()[0].device_kind.lower()
        except Exception:  # pragma: no cover
            kind = ""
        if "v7" in kind and hasattr(pltpu, "CORE_PARALLEL"):
            return (pltpu.CORE_PARALLEL,)
    return ("parallel",)


def _run_rowwise(row_scale, lane_offset, n_rows, lanes):
    tr, nblk = _choose_rows(n_rows, lanes)
    rows_padded = tr * nblk
    kernel = functools.partial(_sinusoid_kernel, rows_per_block=tr)
    out = pl.pallas_call(
        kernel,
        out_shape=jax.ShapeDtypeStruct((rows_padded, lanes), jnp.float32),
        grid=(nblk,),
        in_specs=[pl.BlockSpec((1, lanes), lambda i: (0, 0)),   # row_scale (resident)
                  pl.BlockSpec((1, lanes), lambda i: (0, 0))],  # lane_offset (resident)
        out_specs=pl.BlockSpec((tr, lanes), lambda i: (i, 0)),
        compiler_params=pltpu.CompilerParams(
            dimension_semantics=_dimension_semantics(nblk)),
    )(row_scale, lane_offset)
    return out  # (rows_padded, lanes); caller slices off row padding


def _build_sinusoid_table(n_position, d_hid):
    """Full (1, n_position, d_hid) float32 sinusoid table, built once on-device."""
    W, D = int(n_position), int(d_hid)
    if D % 128 != 0 and 128 % D == 0:
        # Lane-dense flat layout: (W_pad*D/128, 128) -> reshape -> slice rows.
        per_row = 128 // D
        w_pad = _round_up(W, per_row)
        n_rows = (w_pad * D) // 128
        row_scale, lane_offset = _lane_constants_flat(D)
        flat = _run_rowwise(row_scale, lane_offset, n_rows, 128)
        table = flat[:n_rows].reshape(w_pad, D)[:W]
    else:
        # Natural layout with the lane dim padded up to a multiple of 128 so
        # every store is a full-lane unmasked vst; padding sliced off here.
        lanes = _round_up(D, 128)
        row_scale, lane_offset = _lane_constants_2d(D, lanes)
        out = _run_rowwise(row_scale, lane_offset, W, lanes)
        table = out[:W, :D]
    return table[None]  # (1, W, D), matches the PyTorch buffer layout


class PositionalEncoding:
    """JAX/Pallas port of the PyTorch PositionalEncoding module."""

    def __init__(self, d_hid, n_position=200):
        self.d_hid = int(d_hid)
        self.n_position = int(n_position)
        # register_buffer semantics: build the constant table exactly once.
        self.pos_table = _build_sinusoid_table(self.n_position, self.d_hid)
        self._slices = {}  # winsize -> cached (1, winsize, d_hid) slice

    def __call__(self, winsize):
        w = int(winsize)
        assert 0 <= w <= self.n_position
        # Steady-state forward is a dict lookup: the sliced view is computed
        # once per distinct winsize (clone/detach are no-ops for immutable JAX
        # arrays), avoiding a per-call un-jitted slice dispatch + HBM copy.
        cached = self._slices.get(w)
        if cached is None:
            cached = jax.lax.slice(self.pos_table, (0, 0, 0), (1, w, self.d_hid))
            cached = jax.block_until_ready(cached)
            self._slices[w] = cached
        return cached


def _reference_table(n_position, d_hid):
    def get_position_angle_vec(position):
        return [position / np.power(10000, 2 * (hid_j // 2) / d_hid)
                for hid_j in range(d_hid)]
    tab = np.array([get_position_angle_vec(p) for p in range(n_position)])
    tab[:, 0::2] = np.sin(tab[:, 0::2])
    tab[:, 1::2] = np.cos(tab[:, 1::2])
    return tab[None].astype(np.float32)


if __name__ == "__main__":
    # Small, module-consistent shapes: d_hid=32 (hidden), n_position=200, winsize=8.
    d_hid = 32
    n_position = 200
    winsize = 8

    # No learned parameters; the module's only state is the deterministic
    # sinusoid buffer, which the kernel generates once. PRNGKey kept for protocol.
    _ = jax.random.PRNGKey(0)

    module = PositionalEncoding(d_hid, n_position=n_position)
    out = jax.block_until_ready(module(winsize))

    ref_full = _reference_table(n_position, d_hid)
    assert out.shape == (1, winsize, d_hid), out.shape
    assert out.dtype == jnp.float32
    # Forward-path contract (small positions -> tight tolerance).
    np.testing.assert_allclose(np.asarray(out), ref_full[:, :winsize],
                               rtol=1e-5, atol=1e-5)
    # Full cached buffer. Host-f64 lane constants tighten the previous 5e-4
    # atol to 1e-4 (remaining error: f32 angle rounding + f32 sin at pos~200).
    full = jax.block_until_ready(module.pos_table)
    assert full.shape == (1, n_position, d_hid)
    np.testing.assert_allclose(np.asarray(full), ref_full, rtol=1e-5, atol=1e-4)

    # Second forward with the same winsize hits the cache (no new dispatch).
    assert module(winsize) is out

    print("KERNEL_OK")
</pallas_src>

<mosaic_0001>
module attributes {stable_mosaic.version = 11 : i64} {
  func.func @_sinusoid_kernel(%arg0: i32, %arg1: memref<1x128xf32, #tpu.memory_space<vmem>>, %arg2: memref<1x128xf32, #tpu.memory_space<vmem>>, %arg3: memref<50x128xf32, #tpu.memory_space<vmem>>) attributes {dimension_semantics = [#tpu.dimension_semantics<parallel>], iteration_bounds = array<i64: 1>, scalar_prefetch = 0 : i64, scratch_operands = 0 : i64, tpu.core_type = #tpu.core_type<tc>, window_params = [{pipeline_mode = #tpu.pipeline_mode<synchronous>, transform_indices = @transform_0, window_bounds = array<i64: 1, 128>}, {pipeline_mode = #tpu.pipeline_mode<synchronous>, transform_indices = @transform_1, window_bounds = array<i64: 1, 128>}, {transform_indices = @transform_2, window_bounds = array<i64: 50, 128>}]} {
    %c50_i32 = arith.constant 50 : i32
    %0 = arith.muli %arg0, %c50_i32 : i32
    %1 = arith.sitofp %0 : i32 to f32
    %2 = tpu.iota {dimensions = array<i32: 0>} : vector<50x1xi32>
    %3 = arith.sitofp %2 : vector<50x1xi32> to vector<50x1xf32>
    %4 = vector.broadcast %1 : f32 to vector<50x1xf32>
    %5 = arith.addf %4, %3 : vector<50x1xf32>
    %c0 = arith.constant 0 : index
    %c0_0 = arith.constant 0 : index
    %6 = vector.load %arg1[%c0, %c0_0] : memref<1x128xf32, #tpu.memory_space<vmem>>, vector<1x128xf32>
    %7 = vector.broadcast %5 : vector<50x1xf32> to vector<50x128xf32>
    %8 = vector.broadcast %6 : vector<1x128xf32> to vector<50x128xf32>
    %9 = arith.mulf %7, %8 : vector<50x128xf32>
    %c0_1 = arith.constant 0 : index
    %c0_2 = arith.constant 0 : index
    %10 = vector.load %arg2[%c0_1, %c0_2] : memref<1x128xf32, #tpu.memory_space<vmem>>, vector<1x128xf32>
    %11 = vector.broadcast %10 : vector<1x128xf32> to vector<50x128xf32>
    %12 = arith.addf %9, %11 : vector<50x128xf32>
    %13 = math.sin %12 : vector<50x128xf32>
    %c0_3 = arith.constant 0 : index
    %c0_4 = arith.constant 0 : index
    %14 = vector.load %arg3[%c0_3, %c0_4] : memref<50x128xf32, #tpu.memory_space<vmem>>, vector<50x128xf32>
    tpu.vector_store %arg3[%c0_3, %c0_4], %13 {strides = array<i32>} : memref<50x128xf32, #tpu.memory_space<vmem>>, vector<50x128xf32>,
    return
  }
  func.func @transform_0(%arg0: i32) -> (i32, i32) {
    %c0_i32 = arith.constant 0 : i32
    %c0_i32_0 = arith.constant 0 : i32
    %c0_i32_1 = arith.constant 0 : i32
    return %c0_i32, %c0_i32_0 : i32, i32
  }
  func.func @transform_1(%arg0: i32) -> (i32, i32) {
    %c0_i32 = arith.constant 0 : i32
    %c0_i32_0 = arith.constant 0 : i32
    %c0_i32_1 = arith.constant 0 : i32
    return %c0_i32, %c0_i32_0 : i32, i32
  }
  func.func @transform_2(%arg0: i32) -> (i32, i32) {
    %c0_i32 = arith.constant 0 : i32
    %c0_i32_0 = arith.constant 0 : i32
    return %arg0, %c0_i32 : i32, i32
  }
}

</mosaic_0001>

<bundles_post_ra>
// kernel: tpu_custom_call.1
= control target key start
LH: loop header
LB: loop body
LE: loop exit
PB: predicated region body
PF: predicated region fallthrough
CT: control target
= control target key end

     0   :  { %7 = vsyncpa [#allocation3], 0  ;;  %s1566_s0 = inlined_call_operand.hbm [shape: f32[1,128], index: 0, kind: input, shape index: {}]   ;;  %s1567_s1 = inlined_call_operand.vmem [shape: f32[1,128], index: 1, kind: input, shape index: {}]   ;;  %s1568_s2 = inlined_call_operand.hbm [shape: f32[50,128], index: 2, kind: output, shape index: {}]  }
   0x1   :  { %8 = vsyncpa [#allocation4], 0  ;;  %s973_s9 = smov [#allocation2]   ;;  %s925_s13 = scalar_lea.hbm %s1566_s0, 16 }
   0x2   :  { %s15_s10 = sshll.u32 %s973_s9, 4  ;;  %p926_p0 = scmp.ne.s32.totalorder %s1566_s0, %s925_s13  ;;  %s16_s10 = int_to_ptr.vmem [resolvable:$true] %s15_s10 }
   0x3   :  { %p929_p1 = scmp.lt.u32.totalorder %s925_s13, %s1566_s0 }
   0x5   :  { %p931_p2 = pnand %p929_p1, %p926_p0 }
   0x7   :  { %934 = shalt.err (!%p931_p2)
}
   0x8   :  { %s935_s18 = scalar_lea.vmem %s16_s10, 16  ;;  %s939_s19 = scalar_lea.vmem %s16_s10, 32 }
   0x9   :  { %p936_p3 = scmp.ne.s32.totalorder %s16_s10, %s935_s18  ;;  %p940_p4 = scmp.lt.s32.totalorder %s16_s10, %s16_s10 }
   0xa   :  { %p941_p5 = scmp.lt.s32.totalorder %s939_s19, %s935_s18 }
   0xc   :  { %p942_p6 = por %p941_p5, %p940_p4 }
   0xe   :  { %p943_p7 = pnand %p942_p6, %p936_p3 }
  0x10   :  { %946 = shalt.err (!%p943_p7)
}
  0x11   :  { %18 = dma.hbm_to_vmem [thread:$0]  %s1566_s0, 16, %s16_s10, [#allocation3]  }
  0x12   :  { %969 = dma.done.wait [#allocation3], 16  }
  0x13   :  { %970 = vsyncadd [#allocation3], 4294967280  ;;  %v26_v0 = vlaneseq  ;;  %v829_v13 = vld [vmem:[#allocation2] ss:$0 sm:$0xff]  ;;  %v974_v59 = vmov 683565275  }
  0x14   :  { %v830_v14 = vld [vmem:[%s1567_s1] ss:$0 sm:$0xff]  ;;  %v975_v61 = vmov 2475754826   ;;  %v976_v63 = vmov 2131351028  }
  0x15   :  { %v27_v1 = vshrl.u32 %v26_v0, 7  ;;  %s980_s0 = smov [#allocation5]  }
  0x16   :  { %s817_s1 = sshll.u32 %s980_s0, 4  ;;  %s818_s1 = int_to_ptr.vmem [resolvable:$true] %s817_s1 }
  0x17   :  { %v28_v2 = vadd.s32 8, %v27_v1  ;;  %v29_v3 = vadd.s32 16, %v27_v1  ;;  %v31_v4 = vadd.s32 32, %v27_v1  ;;  %v32_v5 = vadd.s32 40, %v27_v1  ;;  %s947_s24 = scalar_lea.vmem %s818_s1, 896  ;;  %p952_p9 = scmp.lt.s32.totalorder %s818_s1, %s818_s1 }
  0x18   :  { %v33_v6 = vadd.s32 48, %v27_v1  ;;  %v34_v7 = vcvt.s32.f32 %v27_v1  ;;  %v30_v18 = vadd.s32 24, %v27_v1  ;;  %v977_v1 = vmov 2102212464   ;;  %p948_p8 = scmp.ne.s32.totalorder %s818_s1, %s947_s24  ;;  %p953_p10 = scmp.lt.s32.totalorder %s947_s24, %s947_s24 }
  0x19   :  { %v35_v8 = vcvt.s32.f32 %v28_v2  ;;  %v36_v9 = vcvt.s32.f32 %v29_v3  ;;  %v38_v10 = vcvt.s32.f32 %v31_v4  ;;  %v39_v11 = vcvt.s32.f32 %v32_v5 }
  0x1a   :  { %v40_v12 = vcvt.s32.f32 %v33_v6  ;;  %v56_v15 = vmul.f32 %v829_v13, %v34_v7  ;;  %v37_v30 = vcvt.s32.f32 %v30_v18  ;;  %v978_v3 = vmov 920167782   ;;  %p954_p11 = por %p953_p10, %p952_p9 }
  0x1b   :  { %v57_v16 = vmul.f32 %v829_v13, %v35_v8  ;;  %v58_v17 = vmul.f32 %v829_v13, %v36_v9  ;;  %v60_v19 = vmul.f32 %v829_v13, %v38_v10  ;;  %v61_v20 = vmul.f32 %v829_v13, %v39_v11 }
  0x1c   :  { %v62_v21 = vmul.f32 %v829_v13, %v40_v12  ;;  %v1013_v22 = vadd.f32 %v830_v14, %v56_v15  ;;  %v59_v39 = vmul.f32 %v829_v13, %v37_v30  ;;  %v979_v11 = vmov 1326507024   ;;  %p955_p12 = pnand %p954_p11, %p948_p8 }
  0x1d   :  { %v1015_v23 = vadd.f32 %v830_v14, %v57_v16  ;;  %v1017_v24 = vadd.f32 %v830_v14, %v58_v17  ;;  %v1019_v25 = vadd.f32 %v830_v14, %v60_v19  ;;  %v1021_v26 = vadd.f32 %v830_v14, %v61_v20 }
  0x1e   :  { %v1023_v27 = vadd.f32 %v830_v14, %v62_v21  ;;  %v77_v28 = vand.u32 2147483647, %v1013_v22  ;;  %v80_v29 = vand.u32 2139095040, %v1013_v22  ;;  %v1035_v48 = vadd.f32 %v830_v14, %v59_v39 }
  0x1f   :  { %v181_v31 = vand.u32 2147483647, %v1015_v23  ;;  %v184_v32 = vand.u32 2139095040, %v1015_v23  ;;  %v288_v37 = vand.u32 2139095040, %v1017_v24  ;;  %v285_v46 = vand.u32 2147483647, %v1017_v24 }
  0x20   :  { %v81_v33 = vshrl.u32 %v80_v29, 23  ;;  %v84_v34 = vand.u32 8388607, %v77_v28  ;;  %vm79_vm12 = vcmp.lt.s32.totalorder %v1013_v22, 0  ;;  %vm1130_vm14 = vcmp.le.f32.partialorder %v77_v28, 0.7853982 }
  0x21   :  { %v185_v35 = vshrl.u32 %v184_v32, 23  ;;  %v188_v36 = vand.u32 8388607, %v181_v31  ;;  %v289_v41 = vshrl.u32 %v288_v37, 23  ;;  %v1043_v56 = vand.u32 8388607, %v285_v46 }
  0x22   :  { %v831_v38 = vadd.s32 4294967169, %v81_v33  ;;  %v85_v42 = vor.u32 8388608, %v84_v34 }
  0x23   :  { %v835_v40 = vadd.s32 4294967169, %v185_v35  ;;  %v189_v44 = vor.u32 8388608, %v188_v36  ;;  %v839_v47 = vadd.s32 4294967169, %v289_v41 }
  0x24   :  { %v87_v43 = vadd.s32 1, %v831_v38  ;;  %v1037_v52 = vshll.u32 %v85_v42, 8 }
  0x25   :  { %v191_v45 = vadd.s32 1, %v835_v40  ;;  %v1039_v55 = vshll.u32 %v189_v44, 8  ;;  %v1045_v57 = vadd.s32 1, %v839_v47 }
  0x26   :  { %vm88_vm0 = vcmp.gt.s32.totalorder %v87_v43, 0 }
  0x27   :  { %v89_v49 = vsel %vm88_vm0, %v87_v43, 0  ;;  %vm192_vm1 = vcmp.gt.s32.totalorder %v191_v45, 0  ;;  %vm296_vm6 = vcmp.gt.s32.totalorder %v1045_v57, 0 }
  0x28   :  { %v90_v50 = vshrl.u32 %v89_v49, 5  ;;  %v91_v51 = vand.u32 31, %v89_v49  ;;  %v193_v53 = vsel %vm192_vm1, %v191_v45, 0 }
  0x29   :  { %v195_v54 = vand.u32 31, %v193_v53  ;;  %v1052_v5 = vshrl.u32 %v193_v53, 5 }
  0x2a   :  { %v92_v58 = vsub.s32 32, %v91_v51  ;;  %v94_v60 = vshll.u32 %v974_v59, %v91_v51  ;;  %v97_v62 = vshll.u32 %v975_v61, %v91_v51  ;;  %v100_v0 = vshll.u32 %v976_v63, %v91_v51 }
  0x2b   :  { %v103_v2 = vshll.u32 %v977_v1, %v91_v51  ;;  %v106_v4 = vshll.u32 %v978_v3, %v91_v51  ;;  %vm109_vm2 = vcmp.lt.s32.totalorder %v90_v50, 1  ;;  %vm110_vm3 = vcmp.lt.s32.totalorder %v90_v50, 2 }
  0x2c   :  { %v93_v6 = vshrl.u32 %v974_v59, %v92_v58  ;;  %v95_v7 = vshrl.u32 %v975_v61, %v92_v58  ;;  %v98_v8 = vshrl.u32 %v976_v63, %v92_v58  ;;  %v101_v9 = vshrl.u32 %v977_v1, %v92_v58 }
  0x2d   :  { %v104_v10 = vshrl.u32 %v978_v3, %v92_v58  ;;  %v107_v12 = vshrl.u32 %v979_v11, %v92_v58  ;;  %vm112_vm4 = vcmp.lt.s32.totalorder %v90_v50, 4  ;;  %v196_v16 = vsub.s32 32, %v195_v54 }
  0x2e   :  { %v96_v13 = vor.u32 %v95_v7, %v94_v60  ;;  %v99_v14 = vor.u32 %v98_v8, %v97_v62  ;;  %v102_v15 = vor.u32 %v101_v9, %v100_v0  ;;  %vm111_vm5 = vcmp.lt.s32.totalorder %v90_v50, 3 }
  0x2f   :  { %v105_v17 = vor.u32 %v104_v10, %v103_v2  ;;  %v108_v18 = vor.u32 %v107_v12, %v106_v4  ;;  %v198_v19 = vshll.u32 %v974_v59, %v195_v54  ;;  %v201_v35 = vshll.u32 %v975_v61, %v195_v54 }
  0x30   :  { %v113_v20 = vsel %vm109_vm2, %v93_v6, %v96_v13  ;;  %v114_v21 = vsel %vm112_vm4, %v102_v15, 2102212464  ;;  %v117_v29 = vsel %vm109_vm2, %v96_v13, %v99_v14  ;;  %v121_v30 = vsel %vm109_vm2, %v99_v14, %v102_v15 }
  0x31   :  { %v115_v32 = vsel %vm111_vm5, %v99_v14, %v114_v21  ;;  %v118_v33 = vsel %vm112_vm4, %v105_v17, 920167782  ;;  %v122_v34 = vsel %vm112_vm4, %v108_v18, 1326507024  ;;  %v197_v38 = vshrl.u32 %v974_v59, %v196_v16 }
  0x32   :  { %v119_v36 = vsel %vm111_vm5, %v102_v15, %v118_v33  ;;  %v123_v37 = vsel %vm111_vm5, %v105_v17, %v122_v34  ;;  %v199_v39 = vshrl.u32 %v975_v61, %v196_v16  ;;  %v116_v40 = vsel %vm110_vm3, %v113_v20, %v115_v32 }
  0x33   :  { %v120_v41 = vsel %vm110_vm3, %v117_v29, %v119_v36  ;;  %v124_v42 = vsel %vm110_vm3, %v121_v30, %v123_v37  ;;  %v202_v43 = vshrl.u32 %v976_v63, %v196_v16  ;;  %v204_v58 = vshll.u32 %v976_v63, %v195_v54 }
  0x34   :  { %v1073_v44 = vmul.u32.u64.low %v1037_v52, %v124_v42  ;;  %v1074_v45 = vmul.u32.u64.high %v1037_v52, %v124_v42, %v1073_v44  ;;  %v1077_v47 = vmul.u32.u64.low %v1037_v52, %v120_v41  ;;  %v1078_v49 = vmul.u32.u64.high %v1037_v52, %v120_v41, %v1077_v47 }
  0x35   :  { %v200_v51 = vor.u32 %v199_v39, %v198_v19  ;;  %v203_v53 = vor.u32 %v202_v43, %v201_v35  ;;  %v205_v60 = vshrl.u32 %v977_v1, %v196_v16  ;;  %v207_v50 = vshll.u32 %v977_v1, %v195_v54 }
  0x36   :  { %v208_v62 = vshrl.u32 %v978_v3, %v196_v16  ;;  %v210_v0 = vshll.u32 %v978_v3, %v195_v54  ;;  %v211_v2 = vshrl.u32 %v979_v11, %v196_v16  ;;  %v132_v4 = vmul.u32 %v1037_v52, %v116_v40 }
  0x37   :  { %v206_v6 = vor.u32 %v205_v60, %v204_v58  ;;  %vm213_vm7 = vcmp.lt.s32.totalorder %v1052_v5, 1  ;;  %vm214_vm8 = vcmp.lt.s32.totalorder %v1052_v5, 2  ;;  %vm134_vm9 = vc.u32 %v1074_v45, %v1077_v47 }
  0x38   :  { %v135_v7 = vadd.s32 1, %v1078_v49  ;;  %v209_v8 = vor.u32 %v208_v62, %v207_v50  ;;  %vm215_vm10 = vcmp.lt.s32.totalorder %v1052_v5, 3  ;;  %v212_v9 = vor.u32 %v211_v2, %v210_v0 }
  0x39   :  { %vm216_vm11 = vcmp.lt.s32.totalorder %v1052_v5, 4  ;;  %v217_v54 = vsel %vm213_vm7, %v197_v38, %v200_v51  ;;  %v221_v10 = vsel %vm213_vm7, %v200_v51, %v203_v53  ;;  %v225_v14 = vsel %vm213_vm7, %v203_v53, %v206_v6 }
  0x3a   :  { %v136_v52 = vsel %vm134_vm9, %v135_v7, %v1078_v49  ;;  %v218_v12 = vsel %vm216_vm11, %v206_v6, 2102212464  ;;  %v222_v13 = vsel %vm216_vm11, %v209_v8, 920167782  ;;  %v226_v18 = vsel %vm216_vm11, %v212_v9, 1326507024 }
  0x3b   :  { %v137_v15 = vadd.s32 %v136_v52, %v132_v4  ;;  %v219_v16 = vsel %vm215_vm10, %v203_v53, %v218_v12  ;;  %v223_v17 = vsel %vm215_vm10, %v206_v6, %v222_v13  ;;  %v227_v21 = vsel %vm215_vm10, %v209_v8, %v226_v18 }
  0x3c   :  { %v220_v19 = vsel %vm214_vm8, %v217_v54, %v219_v16  ;;  %v224_v20 = vsel %vm214_vm8, %v221_v10, %v223_v17  ;;  %v297_v29 = vsel %vm296_vm6, %v1045_v57, 0  ;;  %v228_v32 = vsel %vm214_vm8, %v225_v14, %v227_v21 }
  0x3d   :  { %v138_v30 = vadd.s32 536870912, %v137_v15  ;;  %v1106_v33 = vmul.u32.u64.low %v1039_v55, %v224_v20  ;;  %v1107_v34 = vmul.u32.u64.high %v1039_v55, %v224_v20, %v1106_v33  ;;  %v293_v37 = vor.u32 8388608, %v1043_v56 }
  0x3e   :  { %v1111_v35 = vmul.u32.u64.low %v1039_v55, %v228_v32  ;;  %v1112_v36 = vmul.u32.u64.high %v1039_v55, %v228_v32, %v1111_v35  ;;  %v389_v38 = vand.u32 2147483647, %v1035_v48  ;;  %v299_v40 = vand.u32 31, %v297_v29 }
  0x3f   :  { %v139_v39 = vshrl.u32 %v138_v30, 30  ;;  %v236_v57 = vmul.u32 %v1039_v55, %v220_v19  ;;  %v239_v41 = vadd.s32 1, %v1107_v34  ;;  %v1121_v43 = vshll.u32 %v293_v37, 8 }
  0x40   :  { %v300_v42 = vsub.s32 32, %v299_v40  ;;  %vm238_vm13 = vc.u32 %v1112_v36, %v1106_v33  ;;  %v392_v44 = vand.u32 2139095040, %v1035_v48  ;;  %v1126_v56 = vand.u32 8388607, %v389_v38 }
  0x41   :  { %v140_v5 = vshll.u32 %v139_v39, 30  ;;  %v163_v51 = vsub.s32 4, %v139_v39  ;;  %v240_v53 = vsel %vm238_vm13, %v239_v41, %v1107_v34  ;;  %v298_v58 = vshrl.u32 %v297_v29, 5 }
  0x42   :  { %v241_v60 = vadd.s32 %v240_v53, %v236_v57  ;;  %v302_v50 = vshll.u32 %v974_v59, %v299_v40  ;;  %v303_v62 = vshrl.u32 %v975_v61, %v300_v42  ;;  %v305_v0 = vshll.u32 %v975_v61, %v299_v40 }
  0x43   :  { %v1134_v49 = vsub.s32 %v137_v15, %v140_v5  ;;  %v306_v28 = vshrl.u32 %v976_v63, %v300_v42  ;;  %v308_v4 = vshll.u32 %v976_v63, %v299_v40  ;;  %v309_v6 = vshrl.u32 %v977_v1, %v300_v42 }
  0x44   :  { %v133_v7 = vadd.s32 %v1077_v47, %v1074_v45  ;;  %v242_v8 = vadd.s32 536870912, %v241_v60  ;;  %v311_v9 = vshll.u32 %v977_v1, %v299_v40  ;;  %v393_v54 = vshrl.u32 %v392_v44, 23 }
  0x45   :  { %v143_v2 = vsub.s32 0, %v1134_v49  ;;  %v164_v52 = vsel %vm79_vm12, %v163_v51, %v139_v39  ;;  %v312_v12 = vshrl.u32 %v978_v3, %v300_v42  ;;  %vm320_vm15 = vcmp.lt.s32.totalorder %v298_v58, 4 }
  0x46   :  { %v1151_v13 = vshrl.u32 %v242_v8, 30  ;;  %v301_v14 = vshrl.u32 %v974_v59, %v300_v42  ;;  %v314_v15 = vshll.u32 %v978_v3, %v299_v40  ;;  %v315_v45 = vshrl.u32 %v979_v11, %v300_v42 }
  0x47   :  { %v832_v10 = vmin.u32 %v143_v2, %v1134_v49  ;;  %v304_v16 = vor.u32 %v303_v62, %v302_v50  ;;  %v307_v17 = vor.u32 %v306_v28, %v305_v0  ;;  %v310_v18 = vor.u32 %v309_v6, %v308_v4 }
  0x48   :  { %v244_v19 = vshll.u32 %v1151_v13, 30  ;;  %v313_v20 = vor.u32 %v312_v12, %v311_v9  ;;  %vm317_vm0 = vcmp.lt.s32.totalorder %v298_v58, 1  ;;  %vm319_vm1 = vcmp.lt.s32.totalorder %v298_v58, 3 }
  0x49   :  { %v145_v47 = vclz %v832_v10  ;;  %v316_v29 = vor.u32 %v315_v45, %v314_v15  ;;  %v322_v30 = vsel %vm320_vm15, %v310_v18, 2102212464  ;;  %v843_v32 = vadd.s32 4294967169, %v393_v54 }
  0x4a   :  { %v166_v34 = vsel %vm1130_vm14, 0, %v164_v52  ;;  %v1160_v35 = vsub.s32 %v241_v60, %v244_v19  ;;  %vm318_vm2 = vcmp.lt.s32.totalorder %v298_v58, 2  ;;  %v326_v37 = vsel %vm320_vm15, %v313_v20, 920167782 }
  0x4b   :  { %v833_v21 = vadd.s32 4294967294, %v145_v47  ;;  %v321_v39 = vsel %vm317_vm0, %v301_v14, %v304_v16  ;;  %v325_v40 = vsel %vm317_vm0, %v304_v16, %v307_v17  ;;  %v327_v57 = vsel %vm319_vm1, %v310_v18, %v326_v37 }
  0x4c   :  { %v247_v41 = vsub.s32 0, %v1160_v35  ;;  %v323_v42 = vsel %vm319_vm1, %v307_v17, %v322_v30  ;;  %v329_v44 = vsel %vm317_vm0, %v307_v17, %v310_v18  ;;  %v330_v50 = vsel %vm320_vm15, %v316_v29, 1326507024 }
  0x4d   :  { %vm834_vm3 = vcmp.lt.s32.totalorder %v833_v21, 0  ;;  %vm183_vm4 = vcmp.lt.s32.totalorder %v1015_v23, 0  ;;  %v328_v0 = vsel %vm318_vm2, %v325_v40, %v327_v57  ;;  %v331_v2 = vsel %vm319_vm1, %v313_v20, %v330_v50 }
  0x4e   :  { %v148_v5 = vsel %vm834_vm3, 0, %v833_v21  ;;  %v836_v62 = vmin.u32 %v247_v41, %v1160_v35  ;;  %v332_v6 = vsel %vm318_vm2, %v329_v44, %v331_v2  ;;  %v399_v8 = vadd.s32 1, %v843_v32 }
  0x4f   :  { %v149_v51 = vsub.s32 32, %v148_v5  ;;  %v150_v53 = vshll.u32 %v1134_v49, %v148_v5  ;;  %v153_v60 = vsub.s32 4294967266, %v148_v5  ;;  %v170_v9 = vadd.s32 3, %v166_v34 }
  0x50   :  { %v249_v54 = vclz %v836_v62  ;;  %v324_v49 = vsel %vm318_vm2, %v321_v39, %v323_v42  ;;  %v397_v10 = vor.u32 8388608, %v1126_v56  ;;  %vm400_vm5 = vcmp.gt.s32.totalorder %v399_v8, 0 }
  0x51   :  { %v151_v28 = vshrl.u32 %v133_v7, %v149_v51  ;;  %v154_v4 = vadd.s32 127, %v153_v60  ;;  %v1179_v14 = vmul.u32.u64.low %v1121_v43, %v332_v6  ;;  %v1180_v15 = vmul.u32.u64.high %v1121_v43, %v332_v6, %v1179_v14 }
  0x52   :  { %v837_v45 = vadd.s32 4294967294, %v249_v54  ;;  %v1183_v47 = vmul.u32.u64.low %v1121_v43, %v328_v0  ;;  %v1184_v7 = vmul.u32.u64.high %v1121_v43, %v328_v0, %v1183_v47  ;;  %v267_v58 = vsub.s32 4, %v1151_v13 }
  0x53   :  { %v152_v52 = vor.u32 %v151_v28, %v150_v53  ;;  %v155_v12 = vshll.u32 %v154_v4, 23  ;;  %v401_v18 = vsel %vm400_vm5, %v399_v8, 0  ;;  %v1188_v19 = vand.u32 3, %v170_v9 }
  0x54   :  { %v237_v20 = vadd.s32 %v1106_v33, %v1112_v36  ;;  %vm838_vm6 = vcmp.lt.s32.totalorder %v837_v45, 0  ;;  %v403_v21 = vand.u32 31, %v401_v18  ;;  %v340_v32 = vmul.u32 %v1121_v43, %v324_v49 }
  0x55   :  { %v156_v16 = vor.u32 4788187, %v155_v12  ;;  %v159_v17 = vcvt.s32.f32 %v152_v52  ;;  %v252_v30 = vsel %vm838_vm6, 0, %v837_v45  ;;  %vm342_vm7 = vc.u32 %v1180_v15, %v1183_v47 }
  0x56   :  { %vm1197_vm8 = vcmp.le.f32.partialorder %v181_v31, 0.7853982  ;;  %v253_v37 = vsub.s32 32, %v252_v30  ;;  %v254_v39 = vshll.u32 %v1160_v35, %v252_v30  ;;  %v257_v40 = vsub.s32 4294967266, %v252_v30 }
  0x57   :  { %v157_v29 = vand.u32 2147483647, %v156_v16  ;;  %v343_v33 = vadd.s32 1, %v1184_v7  ;;  %v268_v43 = vsel %vm183_vm4, %v267_v58, %v1151_v13  ;;  %v1206_v57 = vshrl.u32 %v401_v18, 5 }
  0x58   :  { %v404_v5 = vsub.s32 32, %v403_v21  ;;  %v255_v41 = vshrl.u32 %v237_v20, %v253_v37  ;;  %v258_v42 = vadd.s32 127, %v257_v40  ;;  %v406_v44 = vshll.u32 %v974_v59, %v403_v21 }
  0x59   :  { %v160_v36 = vmul.f32 %v159_v17, %v157_v29  ;;  %v344_v31 = vsel %vm342_vm7, %v343_v33, %v1184_v7  ;;  %v409_v60 = vshll.u32 %v975_v61, %v403_v21  ;;  %v412_v13 = vshll.u32 %v976_v63, %v403_v21 }
  0x5a   :  { %v345_v53 = vadd.s32 %v344_v31, %v340_v32  ;;  %v407_v35 = vshrl.u32 %v975_v61, %v404_v5  ;;  %v256_v50 = vor.u32 %v255_v41, %v254_v39  ;;  %v259_v62 = vshll.u32 %v258_v42, 23 }
  0x5b   :  { %v161_v51 = vxor.u32 2147483648, %v160_v36  ;;  %v410_v0 = vshrl.u32 %v976_v63, %v404_v5  ;;  %v413_v4 = vshrl.u32 %v977_v1, %v404_v5  ;;  %v415_v6 = vshll.u32 %v977_v1, %v403_v21 }
  0x5c   :  { %v346_v28 = vadd.s32 536870912, %v345_v53  ;;  %v260_v9 = vor.u32 4788187, %v259_v62  ;;  %v263_v54 = vcvt.s32.f32 %v256_v50  ;;  %v408_v49 = vor.u32 %v407_v35, %v406_v44 }
  0x5d   :  { %v162_v2 = vsel %vm79_vm12, %v161_v51, %v160_v36  ;;  %v411_v12 = vor.u32 %v410_v0, %v409_v60  ;;  %v416_v14 = vshrl.u32 %v978_v3, %v404_v5  ;;  %v418_v7 = vshll.u32 %v978_v3, %v403_v21 }
  0x5e   :  { %v165_v8 = vsel %vm1130_vm14, %v1013_v22, %v162_v2  ;;  %v1221_v52 = vshrl.u32 %v346_v28, 30  ;;  %v261_v45 = vand.u32 2147483647, %v260_v9  ;;  %v419_v16 = vshrl.u32 %v979_v11, %v404_v5 }
  0x5f   :  { %897 = vcosq.f32 %v165_v8  ;;  %v270_v17 = vsel %vm1197_vm8, 0, %v268_v43  ;;  %v417_v58 = vor.u32 %v416_v14, %v415_v6  ;;  %vm421_vm9 = vcmp.lt.s32.totalorder %v1206_v57, 1 }
  0x60   :  { %899 = vsinq.f32 %v165_v8  ;;  %v348_v55 = vshll.u32 %v1221_v52, 30  ;;  %v264_v18 = vmul.f32 %v263_v54, %v261_v45  ;;  %v405_v20 = vshrl.u32 %v974_v59, %v404_v5 }
  0x61   :  { %v414_v29 = vor.u32 %v413_v4, %v412_v13  ;;  %v1233_v30 = vshll.u32 %v397_v10, 8  ;;  %vm172_vm10 = vcmp.lt.s32.totalorder %v1188_v19, 2  ;;  %v420_v32 = vor.u32 %v419_v16, %v418_v7 }
  0x62   :  { %v1236_v21 = vsub.s32 %v345_v53, %v348_v55  ;;  %vm423_vm11 = vcmp.lt.s32.totalorder %v1206_v57, 3  ;;  %vm424_vm12 = vcmp.lt.s32.totalorder %v1206_v57, 4  ;;  %vm169_vm13 = vweird.f32 %v1013_v22 }
  0x63   :  { %v265_v37 = vxor.u32 2147483648, %v264_v18  ;;  %vm287_vm14 = vcmp.lt.s32.totalorder %v1017_v24, 0  ;;  %vm422_vm15 = vcmp.lt.s32.totalorder %v1206_v57, 2  ;;  %v426_v56 = vsel %vm424_vm12, %v414_v29, 2102212464 }
  0x64   :  { %v429_v10 = vsel %vm421_vm9, %v408_v49, %v411_v12  ;;  %vm173_vm0 = vcmp.eq.s32.totalorder %v1188_v19, 0  ;;  %v274_v39 = vadd.s32 3, %v270_v17  ;;  %v351_v40 = vsub.s32 0, %v1236_v21 }
  0x65   :  { %v430_v33 = vsel %vm424_vm12, %v417_v58, 920167782  ;;  %v266_v36 = vsel %vm183_vm4, %v265_v37, %v264_v18  ;;  %v425_v43 = vsel %vm421_vm9, %v405_v20, %v408_v49  ;;  %v427_v5 = vsel %vm423_vm11, %v411_v12, %v426_v56 }
  0x66   :  { %v431_v41 = vsel %vm423_vm11, %v414_v29, %v430_v33  ;;  %v269_v42 = vsel %vm1197_vm8, %v1015_v23, %v266_v36  ;;  %vm1264_vm1 = vcmp.le.f32.partialorder %v285_v46, 0.7853982  ;;  %v840_v44 = vmin.u32 %v351_v40, %v1236_v21 }
  0x67   :  { %v432_v51 = vsel %vm422_vm15, %v429_v10, %v431_v41  ;;  %v433_v53 = vsel %vm421_vm9, %v411_v12, %v414_v29  ;;  %901 = vcosq.f32 %v269_v42  ;;  %v434_v35 = vsel %vm424_vm12, %v420_v32, 1326507024 }
  0x68   :  { %v1276_v34 = vmul.u32.u64.low %v1233_v30, %v432_v51  ;;  %v1277_v60 = vmul.u32.u64.high %v1233_v30, %v432_v51, %v1276_v34  ;;  %vm176_vm2 = vcmp.eq.s32.totalorder %v1188_v19, 2  ;;  %903 = vsinq.f32 %v269_v42 }
  0x69   :  { %v898_v46 = vpop.eup %897  ;;  %v353_v50 = vclz %v840_v44  ;;  %v371_v62 = vsub.s32 4, %v1221_v52  ;;  %v275_v2 = vand.u32 3, %v274_v39  ;;  %v341_v28 = vadd.s32 %v1183_v47, %v1180_v15 }
  0x6a   :  { %v900_v0 = vpop.eup %899  ;;  %v177_v13 = vxor.u32 2147483648, %v898_v46  ;;  %v435_v4 = vsel %vm423_vm11, %v417_v58, %v434_v35  ;;  %v428_v9 = vsel %vm422_vm15, %v425_v43, %v427_v5  ;;  %v493_v45 = vand.u32 2147483647, %v1019_v25 }
  0x6b   :  { %v174_v6 = vxor.u32 2147483648, %v900_v0  ;;  %v841_v8 = vadd.s32 4294967294, %v353_v50  ;;  %v436_v54 = vsel %vm422_vm15, %v433_v53, %v435_v4  ;;  %vm273_vm3 = vweird.f32 %v1015_v23 }
  0x6c   :  { %v178_v49 = vsel %vm176_vm2, %v177_v13, %v900_v0  ;;  %v1291_v12 = vmul.u32.u64.low %v1233_v30, %v436_v54  ;;  %v1292_v14 = vmul.u32.u64.high %v1233_v30, %v436_v54, %v1291_v12  ;;  %v372_v47 = vsel %vm287_vm14, %v371_v62, %v1221_v52 }
  0x6d   :  { %v175_v15 = vsel %vm173_vm0, %v898_v46, %v174_v6  ;;  %vm842_vm4 = vcmp.lt.s32.totalorder %v841_v8, 0  ;;  %v447_v57 = vadd.s32 1, %v1277_v60  ;;  %v444_v17 = vmul.u32 %v1233_v30, %v428_v9 }
  0x6e   :  { %v179_v7 = vsel %vm172_vm10, %v175_v15, %v178_v49  ;;  %v356_v16 = vsel %vm842_vm4, 0, %v841_v8  ;;  %v496_v55 = vand.u32 2139095040, %v1019_v25  ;;  %v374_v52 = vsel %vm1264_vm1, 0, %v372_v47 }
  0x6f   :  { %v180_v58 = vsel %vm169_vm13, nan, %v179_v7  ;;  %v357_v18 = vsub.s32 32, %v356_v16  ;;  %v358_v20 = vshll.u32 %v1236_v21, %v356_v16  ;;  %v361_v29 = vsub.s32 4294967266, %v356_v16 }
  0x70   :  { %vm446_vm5 = vc.u32 %v1292_v14, %v1276_v34  ;;  %v497_v19 = vshrl.u32 %v496_v55, 23  ;;  %v500_v32 = vand.u32 8388607, %v493_v45  ;;  %805 = vst [vmem:[#allocation5] sm:$0xff] %v180_v58  ;;  %vm276_vm6 = vcmp.lt.s32.totalorder %v275_v2, 2 }
  0x71   :  { %v359_v30 = vshrl.u32 %v341_v28, %v357_v18  ;;  %v362_v37 = vadd.s32 127, %v361_v29  ;;  %v448_v22 = vsel %vm446_vm5, %v447_v57, %v1277_v60  ;;  %v902_v56 = vpop.eup %901  ;;  %vm277_vm7 = vcmp.eq.s32.totalorder %v275_v2, 0 }
  0x72   :  { %vm280_vm8 = vcmp.eq.s32.totalorder %v275_v2, 2  ;;  %v449_v21 = vadd.s32 %v448_v22, %v444_v17  ;;  %v847_v10 = vadd.s32 4294967169, %v497_v19  ;;  %v904_v39 = vpop.eup %903  ;;  %v281_v40 = vxor.u32 2147483648, %v902_v56 }
  0x73   :  { %v360_v33 = vor.u32 %v359_v30, %v358_v20  ;;  %v363_v36 = vshll.u32 %v362_v37, 23  ;;  %v378_v43 = vadd.s32 3, %v374_v52  ;;  %v278_v5 = vxor.u32 2147483648, %v904_v39 }
  0x74   :  { %v450_v41 = vadd.s32 536870912, %v449_v21  ;;  %v501_v42 = vor.u32 8388608, %v500_v32  ;;  %v503_v44 = vadd.s32 1, %v847_v10  ;;  %v282_v51 = vsel %vm280_vm8, %v281_v40, %v904_v39 }
  0x75   :  { %v364_v53 = vor.u32 4788187, %v363_v36  ;;  %v367_v35 = vcvt.s32.f32 %v360_v33  ;;  %v600_v46 = vand.u32 2139095040, %v1021_v26  ;;  %v279_v60 = vsel %vm277_vm7, %v902_v56, %v278_v5 }
  0x76   :  { %v451_v50 = vshrl.u32 %v450_v41, 30  ;;  %vm504_vm9 = vcmp.gt.s32.totalorder %v503_v44, 0  ;;  %v597_v62 = vand.u32 2147483647, %v1021_v26  ;;  %v283_v0 = vsel %vm276_vm6, %v279_v60, %v282_v51 }
  0x77   :  { %v365_v13 = vand.u32 2147483647, %v364_v53  ;;  %v505_v28 = vsel %vm504_vm9, %v503_v44, 0  ;;  %v284_v4 = vsel %vm273_vm3, nan, %v283_v0  ;;  %v601_v8 = vshrl.u32 %v600_v46, 23 }
  0x78   :  { %v452_v6 = vshll.u32 %v451_v50, 30  ;;  %v1322_v54 = vand.u32 3, %v378_v43  ;;  %vm391_vm10 = vcmp.lt.s32.totalorder %v1035_v48, 0  ;;  %v507_v49 = vand.u32 31, %v505_v28  ;;  %806 = vst [vmem:[#allocation5 + $0x8] sm:$0xff] %v284_v4 }
  0x79   :  { %v368_v9 = vmul.f32 %v367_v35, %v365_v13  ;;  %v445_v12 = vadd.s32 %v1276_v34, %v1292_v14  ;;  %v1329_v2 = vshll.u32 %v501_v42, 8  ;;  %v1333_v23 = vand.u32 8388607, %v597_v62 }
  0x7a   :  { %v1327_v15 = vsub.s32 %v449_v21, %v452_v6  ;;  %v475_v57 = vsub.s32 4, %v451_v50  ;;  %v1335_v7 = vshrl.u32 %v505_v28, 5  ;;  %v508_v16 = vsub.s32 32, %v507_v49 }
  0x7b   :  { %v369_v47 = vxor.u32 2147483648, %v368_v9  ;;  %v510_v55 = vshll.u32 %v974_v59, %v507_v49  ;;  %v513_v58 = vshll.u32 %v975_v61, %v507_v49  ;;  %v851_v34 = vadd.s32 4294967169, %v601_v8 }
  0x7c   :  { %v455_v17 = vsub.s32 0, %v1327_v15  ;;  %v511_v18 = vshrl.u32 %v975_v61, %v508_v16  ;;  %v514_v20 = vshrl.u32 %v976_v63, %v508_v16  ;;  %v516_v29 = vshll.u32 %v976_v63, %v507_v49 }
  0x7d   :  { %v370_v14 = vsel %vm287_vm14, %v369_v47, %v368_v9  ;;  %v517_v32 = vshrl.u32 %v977_v1, %v508_v16  ;;  %v605_v30 = vor.u32 8388608, %v1333_v23  ;;  %v1353_v37 = vsel %vm391_vm10, %v475_v57, %v451_v50 }
  0x7e   :  { %v373_v52 = vsel %vm1264_vm1, %v1017_v24, %v370_v14  ;;  %v844_v19 = vmin.u32 %v455_v17, %v1327_v15  ;;  %v509_v22 = vshrl.u32 %v974_v59, %v508_v16  ;;  %v519_v56 = vshll.u32 %v977_v1, %v507_v49 }
  0x7f   :  { %905 = vcosq.f32 %v373_v52  ;;  %vm1359_vm11 = vcmp.le.f32.partialorder %v389_v38, 0.7853982  ;;  %v512_v10 = vor.u32 %v511_v18, %v510_v55  ;;  %v515_v39 = vor.u32 %v514_v20, %v513_v58 }
  0x80   :  { %907 = vsinq.f32 %v373_v52  ;;  %v457_v21 = vclz %v844_v19  ;;  %vm384_vm12 = vcmp.eq.s32.totalorder %v1322_v54, 2  ;;  %v518_v40 = vor.u32 %v517_v32, %v516_v29 }
  0x81   :  { %v520_v33 = vshrl.u32 %v978_v3, %v508_v16  ;;  %v522_v36 = vshll.u32 %v978_v3, %v507_v49  ;;  %vm525_vm13 = vcmp.lt.s32.totalorder %v1335_v7, 1  ;;  %vm381_vm14 = vcmp.eq.s32.totalorder %v1322_v54, 0 }
  0x82   :  { %v845_v43 = vadd.s32 4294967294, %v457_v21  ;;  %v523_v38 = vshrl.u32 %v979_v11, %v508_v16  ;;  %vm526_vm15 = vcmp.lt.s32.totalorder %v1335_v7, 2  ;;  %vm528_vm0 = vcmp.lt.s32.totalorder %v1335_v7, 4 }
  0x83   :  { %vm380_vm1 = vcmp.lt.s32.totalorder %v1322_v54, 2  ;;  %v521_v5 = vor.u32 %v520_v33, %v519_v56  ;;  %vm527_vm2 = vcmp.lt.s32.totalorder %v1335_v7, 3  ;;  %v529_v41 = vsel %vm525_vm13, %v509_v22, %v512_v10 }
  0x84   :  { %v530_v42 = vsel %vm528_vm0, %v518_v40, 2102212464  ;;  %vm377_vm3 = vweird.f32 %v1017_v24  ;;  %vm846_vm4 = vcmp.lt.s32.totalorder %v845_v43, 0  ;;  %v524_v44 = vor.u32 %v523_v38, %v522_v36 }
  0x85   :  { %v531_v51 = vsel %vm527_vm2, %v515_v39, %v530_v42  ;;  %v533_v53 = vsel %vm525_vm13, %v512_v10, %v515_v39  ;;  %v460_v35 = vsel %vm846_vm4, 0, %v845_v43  ;;  %v534_v46 = vsel %vm528_vm0, %v521_v5, 920167782 }
  0x86   :  { %v537_v60 = vsel %vm525_vm13, %v515_v39, %v518_v40  ;;  %v607_v50 = vadd.s32 1, %v851_v34  ;;  %v461_v0 = vsub.s32 32, %v460_v35  ;;  %v462_v13 = vshll.u32 %v1327_v15, %v460_v35 }
  0x87   :  { %v465_v28 = vsub.s32 4294967266, %v460_v35  ;;  %v535_v4 = vsel %vm527_vm2, %v518_v40, %v534_v46  ;;  %v532_v6 = vsel %vm526_vm15, %v529_v41, %v531_v51  ;;  %v538_v9 = vsel %vm528_vm0, %v524_v44, 1326507024 }
  0x88   :  { %v536_v8 = vsel %vm526_vm15, %v533_v53, %v535_v4  ;;  %vm608_vm5 = vcmp.gt.s32.totalorder %v607_v50, 0  ;;  %v463_v49 = vshrl.u32 %v445_v12, %v461_v0  ;;  %v539_v57 = vsel %vm527_vm2, %v521_v5, %v538_v9 }
  0x89   :  { %v466_v47 = vadd.s32 127, %v465_v28  ;;  %v609_v15 = vsel %vm608_vm5, %v607_v50, 0  ;;  %v906_v16 = vpop.eup %905  ;;  %v478_v17 = vsel %vm1359_vm11, 0, %v1353_v37  ;;  %v540_v55 = vsel %vm526_vm15, %v537_v60, %v539_v57 }
  0x8a   :  { %v1403_v58 = vmul.u32.u64.low %v1329_v2, %v536_v8  ;;  %v1404_v34 = vmul.u32.u64.high %v1329_v2, %v536_v8, %v1403_v58  ;;  %v908_v14 = vpop.eup %907  ;;  %v385_v12 = vxor.u32 2147483648, %v906_v16  ;;  %v464_v18 = vor.u32 %v463_v49, %v462_v13 }
  0x8b   :  { %v467_v20 = vshll.u32 %v466_v47, 23  ;;  %v611_v29 = vand.u32 31, %v609_v15  ;;  %v382_v52 = vxor.u32 2147483648, %v908_v14  ;;  %v548_v37 = vmul.u32 %v1329_v2, %v532_v6 }
  0x8c   :  { %v1408_v19 = vmul.u32.u64.low %v1329_v2, %v540_v55  ;;  %v1409_v32 = vmul.u32.u64.high %v1329_v2, %v540_v55, %v1408_v19  ;;  %v386_v7 = vsel %vm384_vm12, %v385_v12, %v908_v14  ;;  %v471_v56 = vcvt.s32.f32 %v464_v18 }
  0x8d   :  { %v468_v22 = vor.u32 4788187, %v467_v20  ;;  %v612_v21 = vsub.s32 32, %v611_v29  ;;  %v383_v10 = vsel %vm381_vm14, %v906_v16, %v382_v52  ;;  %v551_v39 = vadd.s32 1, %v1404_v34 }
  0x8e   :  { %v614_v40 = vshll.u32 %v974_v59, %v611_v29  ;;  %v617_v33 = vshll.u32 %v975_v61, %v611_v29  ;;  %v387_v36 = vsel %vm380_vm1, %v383_v10, %v386_v7  ;;  %v482_v2 = vadd.s32 3, %v478_v17 }
  0x8f   :  { %v469_v43 = vand.u32 2147483647, %v468_v22  ;;  %v615_v38 = vshrl.u32 %v975_v61, %v612_v21  ;;  %v388_v5 = vsel %vm377_vm3, nan, %v387_v36  ;;  %vm550_vm6 = vc.u32 %v1409_v32, %v1403_v58 }
  0x90   :  { %v610_v41 = vshrl.u32 %v609_v15, 5  ;;  %v618_v42 = vshrl.u32 %v976_v63, %v612_v21  ;;  %v552_v51 = vsel %vm550_vm6, %v551_v39, %v1404_v34  ;;  %v620_v54 = vshll.u32 %v976_v63, %v611_v29  ;;  %807 = vst [vmem:[#allocation5 + $0x10] sm:$0xff] %v388_v5 }
  0x91   :  { %v472_v44 = vmul.f32 %v471_v56, %v469_v43  ;;  %v616_v53 = vor.u32 %v615_v38, %v614_v40  ;;  %v553_v35 = vadd.s32 %v552_v51, %v548_v37  ;;  %v621_v60 = vshrl.u32 %v977_v1, %v612_v21 }
  0x92   :  { %v619_v46 = vor.u32 %v618_v42, %v617_v33  ;;  %v623_v24 = vshll.u32 %v977_v1, %v611_v29  ;;  %v624_v0 = vshrl.u32 %v978_v3, %v612_v21  ;;  %v626_v13 = vshll.u32 %v978_v3, %v611_v29 }
  0x93   :  { %v473_v50 = vxor.u32 2147483648, %v472_v44  ;;  %v627_v28 = vshrl.u32 %v979_v11, %v612_v21  ;;  %v554_v4 = vadd.s32 536870912, %v553_v35  ;;  %v613_v6 = vshrl.u32 %v974_v59, %v612_v21 }
  0x94   :  { %v622_v8 = vor.u32 %v621_v60, %v620_v54  ;;  %vm629_vm7 = vcmp.lt.s32.totalorder %v610_v41, 1  ;;  %v625_v49 = vor.u32 %v624_v0, %v623_v24  ;;  %vm632_vm8 = vcmp.lt.s32.totalorder %v610_v41, 4 }
  0x95   :  { %v474_v9 = vsel %vm391_vm10, %v473_v50, %v472_v44  ;;  %v628_v47 = vor.u32 %v627_v28, %v626_v13  ;;  %v1440_v15 = vshrl.u32 %v554_v4, 30  ;;  %vm631_vm9 = vcmp.lt.s32.totalorder %v610_v41, 3 }
  0x96   :  { %v477_v57 = vsel %vm1359_vm11, %v1035_v48, %v474_v9  ;;  %v634_v16 = vsel %vm632_vm8, %v622_v8, 2102212464  ;;  %vm630_vm12 = vcmp.lt.s32.totalorder %v610_v41, 2  ;;  %v637_v17 = vsel %vm629_vm7, %v616_v53, %v619_v46 }
  0x97   :  { %909 = vcosq.f32 %v477_v57  ;;  %v638_v55 = vsel %vm632_vm8, %v625_v49, 920167782  ;;  %v556_v34 = vshll.u32 %v1440_v15, 30  ;;  %v633_v14 = vsel %vm629_vm7, %v613_v6, %v616_v53 }
  0x98   :  { %911 = vsinq.f32 %v477_v57  ;;  %v635_v12 = vsel %vm631_vm9, %v619_v46, %v634_v16  ;;  %v639_v18 = vsel %vm631_vm9, %v622_v8, %v638_v55  ;;  %v641_v31 = vsel %vm629_vm7, %v619_v46, %v622_v8 }
  0x99   :  { %v642_v20 = vsel %vm632_vm8, %v628_v47, 1326507024  ;;  %v645_v29 = vshll.u32 %v605_v30, 8  ;;  %v557_v52 = vsub.s32 %v553_v35, %v556_v34  ;;  %v640_v19 = vsel %vm630_vm12, %v637_v17, %v639_v18 }
  0x9a   :  { %v643_v37 = vsel %vm631_vm9, %v625_v49, %v642_v20  ;;  %v636_v10 = vsel %vm630_vm12, %v633_v14, %v635_v12  ;;  %v483_v33 = vand.u32 3, %v482_v2  ;;  %v704_v30 = vand.u32 2139095040, %v1023_v27 }
  0x9b   :  { %v644_v7 = vsel %vm630_vm12, %v641_v31, %v643_v37  ;;  %v1453_v22 = vmul.u32.u64.low %v645_v29, %v640_v19  ;;  %v1454_v56 = vmul.u32.u64.high %v645_v29, %v640_v19, %v1453_v22  ;;  %v559_v21 = vsub.s32 0, %v557_v52 }
  0x9c   :  { %v1458_v39 = vmul.u32.u64.low %v645_v29, %v644_v7  ;;  %v1459_v40 = vmul.u32.u64.high %v645_v29, %v644_v7, %v1458_v39  ;;  %v652_v36 = vmul.u32 %v645_v29, %v636_v10  ;;  %vm481_vm10 = vweird.f32 %v1035_v48 }
  0x9d   :  { %v848_v23 = vmin.u32 %v559_v21, %v557_v52  ;;  %v655_v43 = vadd.s32 1, %v1454_v56  ;;  %vm484_vm11 = vcmp.lt.s32.totalorder %v483_v33, 2  ;;  %vm488_vm13 = vcmp.eq.s32.totalorder %v483_v33, 2 }
  0x9e   :  { %vm654_vm14 = vc.u32 %v1459_v40, %v1453_v22  ;;  %v705_v41 = vshrl.u32 %v704_v30, 23  ;;  %vm485_vm15 = vcmp.eq.s32.totalorder %v483_v33, 0  ;;  %v549_v54 = vadd.s32 %v1403_v58, %v1409_v32 }
  0x9f   :  { %v561_v38 = vclz %v848_v23  ;;  %v656_v51 = vsel %vm654_vm14, %v655_v43, %v1454_v56  ;;  %v579_v24 = vsub.s32 4, %v1440_v15  ;;  %v701_v50 = vand.u32 2147483647, %v1023_v27 }
  0xa0   :  { %v657_v35 = vadd.s32 %v656_v51, %v652_v36  ;;  %v855_v46 = vadd.s32 4294967169, %v705_v41  ;;  %vm495_vm1 = vcmp.lt.s32.totalorder %v1019_v25, 0  ;;  %vm1485_vm3 = vcmp.le.f32.partialorder %v493_v45, 0.7853982 }
  0xa1   :  { %v910_v5 = vpop.eup %909  ;;  %v849_v2 = vadd.s32 4294967294, %v561_v38  ;;  %v708_v16 = vand.u32 8388607, %v701_v50  ;;  %v580_v55 = vsel %vm495_vm1, %v579_v24, %v1440_v15  ;;  %v653_v23 = vadd.s32 %v1453_v22, %v1459_v40 }
  0xa2   :  { %v912_v42 = vpop.eup %911  ;;  %v489_v44 = vxor.u32 2147483648, %v910_v5  ;;  %v658_v28 = vadd.s32 536870912, %v657_v35  ;;  %v711_v4 = vadd.s32 1, %v855_v46  ;;  %v582_v19 = vsel %vm1485_vm3, 0, %v580_v55 }
  0xa3   :  { %v486_v53 = vxor.u32 2147483648, %v912_v42  ;;  %vm850_vm0 = vcmp.lt.s32.totalorder %v849_v2, 0  ;;  %v709_v37 = vor.u32 8388608, %v708_v16  ;;  %vm585_vm12 = vweird.f32 %v1019_v25 }
  0xa4   :  { %v490_v60 = vsel %vm488_vm13, %v489_v44, %v912_v42  ;;  %v564_v13 = vsel %vm850_vm0, 0, %v849_v2  ;;  %v1475_v32 = vshrl.u32 %v658_v28, 30  ;;  %vm712_vm2 = vcmp.gt.s32.totalorder %v711_v4, 0 }
  0xa5   :  { %v487_v0 = vsel %vm485_vm15, %v910_v5, %v486_v53  ;;  %v565_v8 = vsub.s32 32, %v564_v13  ;;  %v566_v9 = vshll.u32 %v557_v52, %v564_v13  ;;  %v569_v49 = vsub.s32 4294967266, %v564_v13 }
  0xa6   :  { %v491_v6 = vsel %vm484_vm11, %v487_v0, %v490_v60  ;;  %v713_v17 = vsel %vm712_vm2, %v711_v4, 0  ;;  %v660_v34 = vshll.u32 %v1475_v32, 30  ;;  %vm1534_vm14 = vcmp.le.f32.partialorder %v597_v62, 0.7853982 }
  0xa7   :  { %v492_v58 = vsel %vm481_vm10, nan, %v491_v6  ;;  %v567_v47 = vshrl.u32 %v549_v54, %v565_v8  ;;  %v570_v57 = vadd.s32 127, %v569_v49  ;;  %v715_v48 = vand.u32 31, %v713_v17 }
  0xa8   :  { %808 = vst [vmem:[#allocation5 + $0x18] sm:$0xff] %v492_v58  ;;  %v661_v31 = vsub.s32 %v657_v35, %v660_v34  ;;  %v714_v36 = vshrl.u32 %v713_v17, 5  ;;  %v586_v6 = vadd.s32 3, %v582_v19  ;;  %vm599_vm15 = vcmp.lt.s32.totalorder %v1021_v26, 0 }
  0xa9   :  { %v568_v14 = vor.u32 %v567_v47, %v566_v9  ;;  %v571_v12 = vshll.u32 %v570_v57, 23  ;;  %v716_v20 = vsub.s32 32, %v715_v48  ;;  %v718_v7 = vshll.u32 %v974_v59, %v715_v48 }
  0xaa   :  { %v663_v15 = vsub.s32 0, %v661_v31  ;;  %v721_v21 = vshll.u32 %v975_v61, %v715_v48  ;;  %v724_v39 = vshll.u32 %v976_v63, %v715_v48  ;;  %v727_v43 = vshll.u32 %v977_v1, %v715_v48 }
  0xab   :  { %v572_v29 = vor.u32 4788187, %v571_v12  ;;  %v575_v52 = vcvt.s32.f32 %v568_v14  ;;  %v719_v56 = vshrl.u32 %v975_v61, %v716_v20  ;;  %v722_v45 = vshrl.u32 %v976_v63, %v716_v20 }
  0xac   :  { %v725_v33 = vshrl.u32 %v977_v1, %v716_v20  ;;  %v852_v30 = vmin.u32 %v663_v15, %v661_v31  ;;  %v717_v5 = vshrl.u32 %v974_v59, %v716_v20  ;;  %v728_v41 = vshrl.u32 %v978_v3, %v716_v20 }
  0xad   :  { %v573_v10 = vand.u32 2147483647, %v572_v29  ;;  %v749_v61 = vshll.u32 %v709_v37, 8  ;;  %v720_v44 = vor.u32 %v719_v56, %v718_v7  ;;  %v723_v2 = vor.u32 %v722_v45, %v721_v21 }
  0xae   :  { %v665_v42 = vclz %v852_v30  ;;  %v726_v51 = vor.u32 %v725_v33, %v724_v39  ;;  %v729_v53 = vor.u32 %v728_v41, %v727_v43  ;;  %v730_v54 = vshll.u32 %v978_v3, %v715_v48 }
  0xaf   :  { %v576_v38 = vmul.f32 %v575_v52, %v573_v10  ;;  %v731_v22 = vshrl.u32 %v979_v11, %v716_v20  ;;  %vm733_vm4 = vcmp.lt.s32.totalorder %v714_v36, 1  ;;  %vm734_vm5 = vcmp.lt.s32.totalorder %v714_v36, 2 }
  0xb0   :  { %v853_v40 = vadd.s32 4294967294, %v665_v42  ;;  %vm735_vm6 = vcmp.lt.s32.totalorder %v714_v36, 3  ;;  %vm736_vm7 = vcmp.lt.s32.totalorder %v714_v36, 4  ;;  %v737_v35 = vsel %vm733_vm4, %v717_v5, %v720_v44 }
  0xb1   :  { %v577_v63 = vxor.u32 2147483648, %v576_v38  ;;  %v732_v1 = vor.u32 %v731_v22, %v730_v54  ;;  %v738_v3 = vsel %vm736_vm7, %v726_v51, 2102212464  ;;  %v741_v11 = vsel %vm733_vm4, %v720_v44, %v723_v2 }
  0xb2   :  { %vm854_vm8 = vcmp.lt.s32.totalorder %v853_v40, 0  ;;  %v739_v24 = vsel %vm735_vm6, %v723_v2, %v738_v3  ;;  %v742_v0 = vsel %vm736_vm7, %v729_v53, 920167782  ;;  %v745_v9 = vsel %vm733_vm4, %v723_v2, %v726_v51 }
  0xb3   :  { %v578_v59 = vsel %vm495_vm1, %v577_v63, %v576_v38  ;;  %v668_v60 = vsel %vm854_vm8, 0, %v853_v40  ;;  %v743_v8 = vsel %vm735_vm6, %v726_v51, %v742_v0  ;;  %v746_v49 = vsel %vm736_vm7, %v732_v1, 1326507024 }
  0xb4   :  { %v581_v46 = vsel %vm1485_vm3, %v1019_v25, %v578_v59  ;;  %v669_v13 = vsub.s32 32, %v668_v60  ;;  %v670_v28 = vshll.u32 %v661_v31, %v668_v60  ;;  %v673_v4 = vsub.s32 4294967266, %v668_v60 }
  0xb5   :  { %913 = vcosq.f32 %v581_v46  ;;  %v744_v57 = vsel %vm734_vm5, %v741_v11, %v743_v8  ;;  %v747_v16 = vsel %vm735_vm6, %v729_v53, %v746_v49  ;;  %v740_v17 = vsel %vm734_vm5, %v737_v35, %v739_v24 }
  0xb6   :  { %915 = vsinq.f32 %v581_v46  ;;  %v671_v58 = vshrl.u32 %v653_v23, %v669_v13  ;;  %v674_v47 = vadd.s32 127, %v673_v4  ;;  %v748_v55 = vsel %vm734_vm5, %v745_v9, %v747_v16 }
  0xb7   :  { %v1521_v34 = vmul.u32.u64.low %v749_v61, %v744_v57  ;;  %v1522_v48 = vmul.u32.u64.high %v749_v61, %v744_v57, %v1521_v34  ;;  %v1524_v18 = vmul.u32.u64.low %v749_v61, %v748_v55  ;;  %v1525_v31 = vmul.u32.u64.high %v749_v61, %v748_v55, %v1524_v18 }
  0xb8   :  { %v672_v14 = vor.u32 %v671_v58, %v670_v28  ;;  %v675_v12 = vshll.u32 %v674_v47, 23  ;;  %v587_v20 = vand.u32 3, %v586_v6  ;;  %v756_v19 = vmul.u32 %v749_v61, %v740_v17 }
  0xb9   :  { %v759_v37 = vadd.s32 1, %v1522_v48  ;;  %v683_v7 = vsub.s32 4, %v1475_v32  ;;  %vm758_vm9 = vc.u32 %v1525_v31, %v1521_v34  ;;  %v757_v11 = vadd.s32 %v1521_v34, %v1525_v31 }
  0xba   :  { %v676_v29 = vor.u32 4788187, %v675_v12  ;;  %v679_v52 = vcvt.s32.f32 %v672_v14  ;;  %vm592_vm10 = vcmp.eq.s32.totalorder %v587_v20, 2  ;;  %vm589_vm11 = vcmp.eq.s32.totalorder %v587_v20, 0 }
  0xbb   :  { %v760_v21 = vsel %vm758_vm9, %v759_v37, %v1522_v48  ;;  %vm588_vm13 = vcmp.lt.s32.totalorder %v587_v20, 2  ;;  %v684_v38 = vsel %vm599_vm15, %v683_v7, %v1475_v32  ;;  %vm689_vm4 = vweird.f32 %v1021_v26 }
  0xbc   :  { %v677_v15 = vand.u32 2147483647, %v676_v29  ;;  %v761_v33 = vadd.s32 %v760_v21, %v756_v19  ;;  %v686_v51 = vsel %vm1534_vm14, 0, %v684_v38  ;;  %vm703_vm5 = vcmp.lt.s32.totalorder %v1023_v27, 0 }
  0xbd   :  { %v690_v32 = vadd.s32 3, %v686_v51  ;;  %vm702_vm6 = vcmp.le.f32.partialorder %v701_v50, 0.7853982 }
  0xbe   :  { %v680_v39 = vmul.f32 %v679_v52, %v677_v15  ;;  %v762_v5 = vadd.s32 536870912, %v761_v33 }
  0xbf   :  { %v914_v56 = vpop.eup %913  ;;  %v691_v22 = vand.u32 3, %v690_v32 }
  0xc0   :  { %v916_v10 = vpop.eup %915  ;;  %v593_v45 = vxor.u32 2147483648, %v914_v56  ;;  %v681_v43 = vxor.u32 2147483648, %v680_v39  ;;  %v763_v44 = vshrl.u32 %v762_v5, 30 }
  0xc1   :  { %v590_v23 = vxor.u32 2147483648, %v916_v10  ;;  %vm696_vm0 = vcmp.eq.s32.totalorder %v691_v22, 2  ;;  %vm693_vm1 = vcmp.eq.s32.totalorder %v691_v22, 0  ;;  %vm692_vm2 = vcmp.lt.s32.totalorder %v691_v22, 2 }
  0xc2   :  { %v594_v36 = vsel %vm592_vm10, %v593_v45, %v916_v10  ;;  %v682_v42 = vsel %vm599_vm15, %v681_v43, %v680_v39  ;;  %v764_v63 = vshll.u32 %v763_v44, 30  ;;  %v787_v55 = vsub.s32 4, %v763_v44 }
  0xc3   :  { %v591_v41 = vsel %vm589_vm11, %v914_v56, %v590_v23  ;;  %v685_v62 = vsel %vm1534_vm14, %v1021_v26, %v682_v42 }
  0xc4   :  { %v595_v61 = vsel %vm588_vm13, %v591_v41, %v594_v36  ;;  %917 = vcosq.f32 %v685_v62  ;;  %v765_v53 = vsub.s32 %v761_v33, %v764_v63  ;;  %v788_v48 = vsel %vm703_vm5, %v787_v55, %v763_v44 }
  0xc5   :  { %v596_v2 = vsel %vm585_vm12, nan, %v595_v61  ;;  %919 = vsinq.f32 %v685_v62  ;;  %v790_v18 = vsel %vm702_vm6, 0, %v788_v48  ;;  %vm793_vm12 = vweird.f32 %v1023_v27 }
  0xc6   :  { %809 = vst [vmem:[#allocation5 + $0x20] sm:$0xff] %v596_v2  ;;  %v767_v54 = vsub.s32 0, %v765_v53  ;;  %v794_v31 = vadd.s32 3, %v790_v18 }
  0xc8   :  { %v856_v40 = vmin.u32 %v767_v54, %v765_v53  ;;  %v795_v20 = vand.u32 3, %v794_v31 }
  0xca   :  { %v769_v59 = vclz %v856_v40  ;;  %vm800_vm7 = vcmp.eq.s32.totalorder %v795_v20, 2  ;;  %vm797_vm8 = vcmp.eq.s32.totalorder %v795_v20, 0  ;;  %vm796_vm9 = vcmp.lt.s32.totalorder %v795_v20, 2 }
  0xcc   :  { %v857_v25 = vadd.s32 4294967294, %v769_v59 }
  0xce   :  { %v918_v1 = vpop.eup %917  ;;  %vm858_vm3 = vcmp.lt.s32.totalorder %v857_v25, 0 }
  0xcf   :  { %v920_v35 = vpop.eup %919  ;;  %v697_v46 = vxor.u32 2147483648, %v918_v1  ;;  %v772_v24 = vsel %vm858_vm3, 0, %v857_v25 }
  0xd0   :  { %v694_v3 = vxor.u32 2147483648, %v920_v35  ;;  %v773_v13 = vsub.s32 32, %v772_v24  ;;  %v774_v28 = vshll.u32 %v765_v53, %v772_v24  ;;  %v777_v4 = vsub.s32 4294967266, %v772_v24 }
  0xd1   :  { %v698_v60 = vsel %vm696_vm0, %v697_v46, %v920_v35 }
  0xd2   :  { %v695_v0 = vsel %vm693_vm1, %v918_v1, %v694_v3  ;;  %v775_v9 = vshrl.u32 %v757_v11, %v773_v13  ;;  %v778_v49 = vadd.s32 127, %v777_v4 }
  0xd3   :  { %v699_v6 = vsel %vm692_vm2, %v695_v0, %v698_v60 }
  0xd4   :  { %v700_v8 = vsel %vm689_vm4, nan, %v699_v6  ;;  %v776_v58 = vor.u32 %v775_v9, %v774_v28  ;;  %v779_v47 = vshll.u32 %v778_v49, 23 }
  0xd5   :  { %810 = vst [vmem:[#allocation5 + $0x28] sm:$0xff] %v700_v8 }
  0xd6   :  { %v780_v57 = vor.u32 4788187, %v779_v47  ;;  %v783_v16 = vcvt.s32.f32 %v776_v58 }
  0xd8   :  { %v781_v17 = vand.u32 2147483647, %v780_v57 }
  0xda   :  { %v784_v34 = vmul.f32 %v783_v16, %v781_v17 }
  0xdc   :  { %v785_v26 = vxor.u32 2147483648, %v784_v34 }
  0xde   :  { %v786_v14 = vsel %vm703_vm5, %v785_v26, %v784_v34 }
  0xdf   :  { %v789_v12 = vsel %vm702_vm6, %v1023_v27, %v786_v14 }
  0xe0   :  { %921 = vcosq.f32 %v789_v12 }
  0xe1   :  { %923 = vsinq.f32 %v789_v12 }
  0xea   :  { %v922_v29 = vpop.eup %921 }
  0xeb   :  { %v924_v52 = vpop.eup %923  ;;  %v801_v19 = vxor.u32 2147483648, %v922_v29 }
  0xec   :  { %v798_v37 = vxor.u32 2147483648, %v924_v52 }
  0xed   :  { %v802_v50 = vsel %vm800_vm7, %v801_v19, %v924_v52 }
  0xee   :  { %v799_v15 = vsel %vm797_vm8, %v922_v29, %v798_v37 }
  0xef   :  { %v803_v7 = vsel %vm796_vm9, %v799_v15, %v802_v50 }
  0xf0   :  { %v804_v56 = vsel %vm793_vm12, nan, %v803_v7 }
  0xf1   :  { %811 = vst [vmem:[#allocation5 + $0x30] sm:$0x3] %v804_v56 }
  0xf2   :  { %958 = shalt.err (!%p955_p12)
}
  0xf3   :  { %s959_s27 = scalar_lea.hbm %s1568_s2, 896 }
  0xf4   :  { %p960_p13 = scmp.ne.s32.totalorder %s1568_s2, %s959_s27  ;;  %p963_p0 = scmp.lt.u32.totalorder %s959_s27, %s1568_s2 }
  0xf6   :  { %p965_p1 = pnand %p963_p0, %p960_p13 }
  0xf8   :  { %968 = shalt.err (!%p965_p1)
}
  0xf9   :  { %s981_s4 = smov 128   ;;  %s982_s5 = smov 8  }
  0xfa   :  { %823 = dma.vmem_to_hbm [thread:$0]  %s818_s1, 896, %s1568_s2, [#allocation4], %s981_s4, %s981_s4, %s982_s5  }
  0xfb   :  { %971 = dma.done.wait [#allocation4], 896  }
  0xfc   :  { %972 = vsyncadd [#allocation4], 4294966400 }
  0xfd   :  { %827 = vsyncpa [#allocation3], 1 }
  0xfe   :  { %828 = vsyncpa [#allocation4], 1 }

</bundles_post_ra>
